<compile_context>
chip_gen: v7x
topology: tpu7x:2x2x1
jax: 0.10.0
libtpu: 0.0.40
codegen_flags: <defaults>
</compile_context>

<pallas_src>
import jax
import jax.numpy as jnp
from jax.experimental import pallas as pl
from jax.experimental.pallas import tpu as pltpu


def _round_up(x, m):
    return (x + m - 1) // m * m


def _aggregator_kernel(x_ref, m_ref, inv_ref, w_ref, b_ref, o_ref, sum_acc):
    # Grid: axis 0 = B tiles (parallel), axis 1 = A tiles (reduction, arbitrary).
    j = pl.program_id(1)
    rb = x_ref.shape[0]

    @pl.when(j == 0)
    def _init():
        sum_acc[...] = jnp.zeros_like(sum_acc)

    # Masked partial sum over this A tile.  Mask stays lane-dense (rb, ta) and
    # enters as the LHS of one small MXU matmul per batch row -> no (B, A, 1)
    # padded mask stream and no in-kernel mask relayout.
    for r in range(rb):                                   # static unroll
        m_r = m_ref[pl.ds(r, 1), :]                       # (1, ta)   f32
        x_r = x_ref[r].astype(jnp.float32)                # (ta, D_in); bf16 x upcast (v5e-safe)
        sum_acc[pl.ds(r, 1), :] += jnp.dot(
            m_r, x_r, preferred_element_type=jnp.float32)

    @pl.when(j == pl.num_programs(1) - 1)
    def _finalize():
        # Exact 1/count precomputed in the wrapper; (rb,1) lane-broadcast.
        mean = sum_acc[...] * inv_ref[...]                # (rb, D_in)
        # Linear + BatchNorm folded offline into W'/b'.
        y = jnp.dot(mean, w_ref[...], preferred_element_type=jnp.float32) + b_ref[...]
        o_ref[...] = jnp.maximum(y, 0.0).astype(o_ref.dtype)   # ReLU; Dropout = identity (eval)


def fold_inference_params(params):
    """One-time eval-mode prep: fold BN + bias into W'/b', pad D_out to 128 lanes."""
    eps = 1e-5
    scale = params["gamma"] * jax.lax.rsqrt(params["running_var"] + eps)     # (1, D_out)
    w_f = (params["w"] * scale).astype(jnp.float32)                          # (D_in, D_out)
    b_f = ((params["b"] - params["running_mean"]) * scale
           + params["beta"]).astype(jnp.float32)                             # (1, D_out)
    d_out = w_f.shape[1]
    d_out_pad = _round_up(d_out, 128)
    if d_out_pad != d_out:
        w_f = jnp.pad(w_f, ((0, 0), (0, d_out_pad - d_out)))
        b_f = jnp.pad(b_f, ((0, 0), (0, d_out_pad - d_out)))
    return {"w": w_f, "b": b_f, "d_out": d_out}


def content_feature_aggregator(x, mask, folded, *, rb=16, ta=None,
                               vmem_limit_bytes=96 * 1024 * 1024):
    """x: (B, A, D_in) f32 or bf16; mask: (B, A) (bool/float) or None; -> (B, D_out) f32."""
    B, A, D_in = x.shape
    D_out_pad = folded["w"].shape[1]
    D_out = folded["d_out"]

    if mask is None:
        mask = jnp.ones((B, A), jnp.float32)
    mask = mask.astype(jnp.float32)

    # Per-generation VMEM budget: <= 3/4 of physical VMEM (v7x: 64 MiB -> 48 MiB;
    # v5e/v6e: 128 MiB -> 96 MiB).  Conservative fallback if query fails.
    try:
        vmem_cap = pltpu.get_tpu_info().vmem_capacity_bytes
    except Exception:
        vmem_cap = 64 * 1024 * 1024
    vmem_limit = int(min(vmem_limit_bytes, vmem_cap * 3 // 4))

    # B tile: multiple of 8; ensure >= 2 tiles when possible so the "parallel"
    # grid axis spans both v7x TensorCores.
    rb = max(8, (min(rb, _round_up(B, 8)) // 8) * 8)
    if (B + rb - 1) // rb < 2 and B > 8:
        rb = _round_up((B + 1) // 2, 8)

    # A tile from a corrected VMEM model: lane padding of D_in to 128, sublane
    # padding, double-buffered streamed inputs (x + mask), resident W/b/inv/out,
    # the scratch accumulator, and headroom for Mosaic internal scratch.
    d_in_pad = _round_up(D_in, 128)
    x_item = jnp.dtype(x.dtype).itemsize
    fixed = (_round_up(D_in, 8) * D_out_pad * 4 * 2     # folded W (resident; worst-case x2)
             + 8 * D_out_pad * 4 * 2                    # folded bias
             + _round_up(rb, 8) * 128 * 4 * 2           # inv_count (lane-padded)
             + rb * D_out_pad * 4 * 2                   # output block
             + rb * d_in_pad * 4)                       # sum accumulator scratch
    per_ta = 2 * rb * d_in_pad * x_item + 2 * _round_up(rb, 8) * 4   # x + mask, double-buffered
    headroom = 4 * 1024 * 1024
    ta_fit = max(128, ((vmem_limit - headroom - fixed) // per_ta) // 128 * 128)
    a_full = _round_up(A, 128)
    ta = a_full if ta is None else _round_up(ta, 128)
    ta = max(128, min(ta, ta_fit, a_full))

    B_pad = _round_up(B, rb)
    A_pad = _round_up(A, ta)

    # Exact inverse count from the unpadded mask (no in-kernel count / reciprocal).
    inv = 1.0 / jnp.clip(jnp.sum(mask, axis=1, keepdims=True), 1.0, None)    # (B, 1)
    if (B_pad, A_pad) != (B, A):
        x = jnp.pad(x, ((0, B_pad - B), (0, A_pad - A), (0, 0)))
        mask = jnp.pad(mask, ((0, B_pad - B), (0, A_pad - A)))
    if B_pad != B:
        inv = jnp.pad(inv, ((0, B_pad - B), (0, 0)), constant_values=1.0)

    grid = (B_pad // rb, A_pad // ta)

    grid_spec = pltpu.PrefetchScalarGridSpec(
        num_scalar_prefetch=0,
        grid=grid,
        in_specs=[
            pl.BlockSpec((rb, ta, D_in), lambda i, j: (i, j, 0)),    # x    (streamed)
            pl.BlockSpec((rb, ta), lambda i, j: (i, j)),             # mask (streamed, lane-dense)
            pl.BlockSpec((rb, 1), lambda i, j: (i, 0)),              # 1/count (tiny, per B-tile)
            # NOTE: W/bias are grid-invariant; Pallas skips re-copying an unchanged
            # block, so their HBM traffic is one-shot.
            pl.BlockSpec((D_in, D_out_pad), lambda i, j: (0, 0)),    # folded W (resident)
            pl.BlockSpec((1, D_out_pad), lambda i, j: (0, 0)),       # folded bias (resident)
        ],
        out_specs=pl.BlockSpec((rb, D_out_pad), lambda i, j: (i, 0)),
        scratch_shapes=[pltpu.VMEM((rb, D_in), jnp.float32)],        # sum_x accumulator
    )

    out = pl.pallas_call(
        _aggregator_kernel,
        out_shape=jax.ShapeDtypeStruct((B_pad, D_out_pad), jnp.float32),
        grid_spec=grid_spec,
        compiler_params=pltpu.CompilerParams(
            dimension_semantics=("parallel", "arbitrary"),
            vmem_limit_bytes=vmem_limit,
        ),
    )(x, mask, inv, folded["w"], folded["b"])

    return out[:B, :D_out]


def init_params(key, input_dim, output_dim):
    k_w, k_b, k_g, k_be, k_rm, k_rv = jax.random.split(key, 6)
    bound = 1.0 / jnp.sqrt(input_dim)
    w = jax.random.uniform(k_w, (input_dim, output_dim), jnp.float32, -bound, bound)
    b = jax.random.uniform(k_b, (1, output_dim), jnp.float32, -bound, bound)
    gamma = 1.0 + 0.1 * jax.random.normal(k_g, (1, output_dim), jnp.float32)
    beta = 0.1 * jax.random.normal(k_be, (1, output_dim), jnp.float32)
    running_mean = 0.1 * jax.random.normal(k_rm, (1, output_dim), jnp.float32)
    running_var = jnp.abs(1.0 + 0.1 * jax.random.normal(k_rv, (1, output_dim), jnp.float32))
    return {"w": w, "b": b, "gamma": gamma, "beta": beta,
            "running_mean": running_mean, "running_var": running_var}


def reference_forward(x, mask, params):
    """Pure-JAX reference (eval-mode PyTorch semantics), un-folded params."""
    masked_x = x.astype(jnp.float32) * mask[:, :, None]
    sum_x = masked_x.sum(axis=1)
    count = jnp.clip(mask.sum(axis=1, keepdims=True), 1.0, None)
    mean_x = sum_x / count
    y = mean_x @ params["w"] + params["b"]
    y = (y - params["running_mean"]) * jax.lax.rsqrt(params["running_var"] + 1e-5)
    y = y * params["gamma"] + params["beta"]
    return jnp.maximum(y, 0.0)


if __name__ == "__main__":
    key = jax.random.PRNGKey(0)
    k_x, k_m, k_p, k_x2, k_m2 = jax.random.split(key, 5)

    # Small shape implied by the forward: (batch=2, num_articles=8, input_dim=32) -> output_dim=16.
    B, A, D_in, D_out = 2, 8, 32, 16
    x = jax.random.normal(k_x, (B, A, D_in), jnp.float32)
    mask = (jax.random.uniform(k_m, (B, A)) > 0.3).astype(jnp.float32)
    params = init_params(k_p, D_in, D_out)
    folded = fold_inference_params(params)   # one-time eval-mode param prep

    out = jax.block_until_ready(content_feature_aggregator(x, mask, folded))
    ref = reference_forward(x, mask, params)
    assert out.shape == (B, D_out)
    # Tolerance covers BN folding + default-precision MXU dots.
    assert jnp.allclose(out, ref, atol=2e-2, rtol=1e-2), "f32 mismatch vs reference"

    # Multi-tile check: exercises B/A padding, the j>0 accumulation path, and
    # the init/finalize pl.when branches (review correctness concern).
    B2, A2 = 24, 300
    x2 = jax.random.normal(k_x2, (B2, A2, D_in), jnp.float32)
    mask2 = (jax.random.uniform(k_m2, (B2, A2)) > 0.3).astype(jnp.float32)
    out2 = jax.block_until_ready(
        content_feature_aggregator(x2, mask2, folded, rb=8, ta=128))
    ref2 = reference_forward(x2, mask2, params)
    assert out2.shape == (B2, D_out)
    assert jnp.allclose(out2, ref2, atol=2e-2, rtol=1e-2), "multi-tile mismatch vs reference"

    # bf16-streamed x (halves the dominant HBM stream; f32 accumulation in-kernel).
    out_bf16 = jax.block_until_ready(
        content_feature_aggregator(x2.astype(jnp.bfloat16), mask2, folded, rb=8, ta=128))
    assert jnp.allclose(out_bf16, ref2, atol=5e-2, rtol=5e-2), "bf16 mismatch vs reference"

    print("KERNEL_OK")
</pallas_src>

<mosaic_0001>
module attributes {stable_mosaic.version = 11 : i64} {
  func.func @_aggregator_kernel(%arg0: i32, %arg1: i32, %arg2: memref<8x128x32xf32, #tpu.memory_space<vmem>>, %arg3: memref<8x128xf32, #tpu.memory_space<vmem>>, %arg4: memref<8x1xf32, #tpu.memory_space<vmem>>, %arg5: memref<32x128xf32, #tpu.memory_space<vmem>>, %arg6: memref<1x128xf32, #tpu.memory_space<vmem>>, %arg7: memref<8x128xf32, #tpu.memory_space<vmem>>, %arg8: memref<8x32xf32, #tpu.memory_space<vmem>>) attributes {dimension_semantics = [#tpu.dimension_semantics<parallel>, #tpu.dimension_semantics<arbitrary>], iteration_bounds = array<i64: 1, 1>, scalar_prefetch = 0 : i64, scratch_operands = 1 : i64, tpu.core_type = #tpu.core_type<tc>, window_params = [{transform_indices = @transform_0, window_bounds = array<i64: 8, 128, 32>}, {transform_indices = @transform_1, window_bounds = array<i64: 8, 128>}, {transform_indices = @transform_2, window_bounds = array<i64: 8, 1>}, {pipeline_mode = #tpu.pipeline_mode<synchronous>, transform_indices = @transform_3, window_bounds = array<i64: 32, 128>}, {pipeline_mode = #tpu.pipeline_mode<synchronous>, transform_indices = @transform_4, window_bounds = array<i64: 1, 128>}, {transform_indices = @transform_5, window_bounds = array<i64: 8, 128>}]} {
    %c0_i32 = arith.constant 0 : i32
    %0 = arith.cmpi eq, %arg1, %c0_i32 : i32
    %1 = arith.extui %0 : i1 to i32
    %c0_i32_0 = arith.constant 0 : i32
    %2 = arith.cmpi ne, %1, %c0_i32_0 : i32
    scf.if %2 {
      %cst_74 = arith.constant 0.000000e+00 : f32
      %62 = vector.broadcast %cst_74 : f32 to vector<8x32xf32>
      %c0_75 = arith.constant 0 : index
      %c0_76 = arith.constant 0 : index
      %63 = vector.load %arg8[%c0_75, %c0_76] : memref<8x32xf32, #tpu.memory_space<vmem>>, vector<8x32xf32>
      tpu.vector_store %arg8[%c0_75, %c0_76], %62 {strides = array<i32>} : memref<8x32xf32, #tpu.memory_space<vmem>>, vector<8x32xf32>,
    } else {
    }
    %c0 = arith.constant 0 : index
    %c0_1 = arith.constant 0 : index
    %3 = vector.load %arg3[%c0, %c0_1] : memref<8x128xf32, #tpu.memory_space<vmem>>, vector<1x128xf32>
    %c0_2 = arith.constant 0 : index
    %c0_3 = arith.constant 0 : index
    %c0_4 = arith.constant 0 : index
    %4 = vector.load %arg2[%c0_2, %c0_3, %c0_4] : memref<8x128x32xf32, #tpu.memory_space<vmem>>, vector<1x128x32xf32>
    %5 = vector.shape_cast %4 : vector<1x128x32xf32> to vector<128x32xf32>
    %c0_5 = arith.constant 0 : index
    %c0_6 = arith.constant 0 : index
    %6 = vector.load %arg8[%c0_5, %c0_6] : memref<8x32xf32, #tpu.memory_space<vmem>>, vector<1x32xf32>
    %cst = arith.constant dense<0.000000e+00> : vector<1x32xf32>
    %7 = tpu.matmul %3, %5, %cst {dimension_numbers = #tpu.dot_dimension_numbers<[1], [0], [0], [1], [0, 0, 1, 1], [], []>} : vector<1x128xf32>, vector<128x32xf32>, vector<1x32xf32> -> vector<1x32xf32>
    %8 = arith.addf %6, %7 : vector<1x32xf32>
    %c0_7 = arith.constant 0 : index
    %c0_8 = arith.constant 0 : index
    %9 = vector.load %arg8[%c0_7, %c0_8] : memref<8x32xf32, #tpu.memory_space<vmem>>, vector<1x32xf32>
    tpu.vector_store %arg8[%c0_7, %c0_8], %8 {strides = array<i32>} : memref<8x32xf32, #tpu.memory_space<vmem>>, vector<1x32xf32>,
    %c1 = arith.constant 1 : index
    %c0_9 = arith.constant 0 : index
    %10 = vector.load %arg3[%c1, %c0_9] : memref<8x128xf32, #tpu.memory_space<vmem>>, vector<1x128xf32>
    %c1_10 = arith.constant 1 : index
    %c0_11 = arith.constant 0 : index
    %c0_12 = arith.constant 0 : index
    %11 = vector.load %arg2[%c1_10, %c0_11, %c0_12] : memref<8x128x32xf32, #tpu.memory_space<vmem>>, vector<1x128x32xf32>
    %12 = vector.shape_cast %11 : vector<1x128x32xf32> to vector<128x32xf32>
    %c1_13 = arith.constant 1 : index
    %c0_14 = arith.constant 0 : index
    %13 = vector.load %arg8[%c1_13, %c0_14] : memref<8x32xf32, #tpu.memory_space<vmem>>, vector<1x32xf32>
    %cst_15 = arith.constant dense<0.000000e+00> : vector<1x32xf32>
    %14 = tpu.matmul %10, %12, %cst_15 {dimension_numbers = #tpu.dot_dimension_numbers<[1], [0], [0], [1], [0, 0, 1, 1], [], []>} : vector<1x128xf32>, vector<128x32xf32>, vector<1x32xf32> -> vector<1x32xf32>
    %15 = arith.addf %13, %14 : vector<1x32xf32>
    %c1_16 = arith.constant 1 : index
    %c0_17 = arith.constant 0 : index
    %16 = vector.load %arg8[%c1_16, %c0_17] : memref<8x32xf32, #tpu.memory_space<vmem>>, vector<1x32xf32>
    tpu.vector_store %arg8[%c1_16, %c0_17], %15 {strides = array<i32>} : memref<8x32xf32, #tpu.memory_space<vmem>>, vector<1x32xf32>,
    %c2 = arith.constant 2 : index
    %c0_18 = arith.constant 0 : index
    %17 = vector.load %arg3[%c2, %c0_18] : memref<8x128xf32, #tpu.memory_space<vmem>>, vector<1x128xf32>
    %c2_19 = arith.constant 2 : index
    %c0_20 = arith.constant 0 : index
    %c0_21 = arith.constant 0 : index
    %18 = vector.load %arg2[%c2_19, %c0_20, %c0_21] : memref<8x128x32xf32, #tpu.memory_space<vmem>>, vector<1x128x32xf32>
    %19 = vector.shape_cast %18 : vector<1x128x32xf32> to vector<128x32xf32>
    %c2_22 = arith.constant 2 : index
    %c0_23 = arith.constant 0 : index
    %20 = vector.load %arg8[%c2_22, %c0_23] : memref<8x32xf32, #tpu.memory_space<vmem>>, vector<1x32xf32>
    %cst_24 = arith.constant dense<0.000000e+00> : vector<1x32xf32>
    %21 = tpu.matmul %17, %19, %cst_24 {dimension_numbers = #tpu.dot_dimension_numbers<[1], [0], [0], [1], [0, 0, 1, 1], [], []>} : vector<1x128xf32>, vector<128x32xf32>, vector<1x32xf32> -> vector<1x32xf32>
    %22 = arith.addf %20, %21 : vector<1x32xf32>
    %c2_25 = arith.constant 2 : index
    %c0_26 = arith.constant 0 : index
    %23 = vector.load %arg8[%c2_25, %c0_26] : memref<8x32xf32, #tpu.memory_space<vmem>>, vector<1x32xf32>
    tpu.vector_store %arg8[%c2_25, %c0_26], %22 {strides = array<i32>} : memref<8x32xf32, #tpu.memory_space<vmem>>, vector<1x32xf32>,
    %c3 = arith.constant 3 : index
    %c0_27 = arith.constant 0 : index
    %24 = vector.load %arg3[%c3, %c0_27] : memref<8x128xf32, #tpu.memory_space<vmem>>, vector<1x128xf32>
    %c3_28 = arith.constant 3 : index
    %c0_29 = arith.constant 0 : index
    %c0_30 = arith.constant 0 : index
    %25 = vector.load %arg2[%c3_28, %c0_29, %c0_30] : memref<8x128x32xf32, #tpu.memory_space<vmem>>, vector<1x128x32xf32>
    %26 = vector.shape_cast %25 : vector<1x128x32xf32> to vector<128x32xf32>
    %c3_31 = arith.constant 3 : index
    %c0_32 = arith.constant 0 : index
    %27 = vector.load %arg8[%c3_31, %c0_32] : memref<8x32xf32, #tpu.memory_space<vmem>>, vector<1x32xf32>
    %cst_33 = arith.constant dense<0.000000e+00> : vector<1x32xf32>
    %28 = tpu.matmul %24, %26, %cst_33 {dimension_numbers = #tpu.dot_dimension_numbers<[1], [0], [0], [1], [0, 0, 1, 1], [], []>} : vector<1x128xf32>, vector<128x32xf32>, vector<1x32xf32> -> vector<1x32xf32>
    %29 = arith.addf %27, %28 : vector<1x32xf32>
    %c3_34 = arith.constant 3 : index
    %c0_35 = arith.constant 0 : index
    %30 = vector.load %arg8[%c3_34, %c0_35] : memref<8x32xf32, #tpu.memory_space<vmem>>, vector<1x32xf32>
    tpu.vector_store %arg8[%c3_34, %c0_35], %29 {strides = array<i32>} : memref<8x32xf32, #tpu.memory_space<vmem>>, vector<1x32xf32>,
    %c4 = arith.constant 4 : index
    %c0_36 = arith.constant 0 : index
    %31 = vector.load %arg3[%c4, %c0_36] : memref<8x128xf32, #tpu.memory_space<vmem>>, vector<1x128xf32>
    %c4_37 = arith.constant 4 : index
    %c0_38 = arith.constant 0 : index
    %c0_39 = arith.constant 0 : index
    %32 = vector.load %arg2[%c4_37, %c0_38, %c0_39] : memref<8x128x32xf32, #tpu.memory_space<vmem>>, vector<1x128x32xf32>
    %33 = vector.shape_cast %32 : vector<1x128x32xf32> to vector<128x32xf32>
    %c4_40 = arith.constant 4 : index
    %c0_41 = arith.constant 0 : index
    %34 = vector.load %arg8[%c4_40, %c0_41] : memref<8x32xf32, #tpu.memory_space<vmem>>, vector<1x32xf32>
    %cst_42 = arith.constant dense<0.000000e+00> : vector<1x32xf32>
    %35 = tpu.matmul %31, %33, %cst_42 {dimension_numbers = #tpu.dot_dimension_numbers<[1], [0], [0], [1], [0, 0, 1, 1], [], []>} : vector<1x128xf32>, vector<128x32xf32>, vector<1x32xf32> -> vector<1x32xf32>
    %36 = arith.addf %34, %35 : vector<1x32xf32>
    %c4_43 = arith.constant 4 : index
    %c0_44 = arith.constant 0 : index
    %37 = vector.load %arg8[%c4_43, %c0_44] : memref<8x32xf32, #tpu.memory_space<vmem>>, vector<1x32xf32>
    tpu.vector_store %arg8[%c4_43, %c0_44], %36 {strides = array<i32>} : memref<8x32xf32, #tpu.memory_space<vmem>>, vector<1x32xf32>,
    %c5 = arith.constant 5 : index
    %c0_45 = arith.constant 0 : index
    %38 = vector.load %arg3[%c5, %c0_45] : memref<8x128xf32, #tpu.memory_space<vmem>>, vector<1x128xf32>
    %c5_46 = arith.constant 5 : index
    %c0_47 = arith.constant 0 : index
    %c0_48 = arith.constant 0 : index
    %39 = vector.load %arg2[%c5_46, %c0_47, %c0_48] : memref<8x128x32xf32, #tpu.memory_space<vmem>>, vector<1x128x32xf32>
    %40 = vector.shape_cast %39 : vector<1x128x32xf32> to vector<128x32xf32>
    %c5_49 = arith.constant 5 : index
    %c0_50 = arith.constant 0 : index
    %41 = vector.load %arg8[%c5_49, %c0_50] : memref<8x32xf32, #tpu.memory_space<vmem>>, vector<1x32xf32>
    %cst_51 = arith.constant dense<0.000000e+00> : vector<1x32xf32>
    %42 = tpu.matmul %38, %40, %cst_51 {dimension_numbers = #tpu.dot_dimension_numbers<[1], [0], [0], [1], [0, 0, 1, 1], [], []>} : vector<1x128xf32>, vector<128x32xf32>, vector<1x32xf32> -> vector<1x32xf32>
    %43 = arith.addf %41, %42 : vector<1x32xf32>
    %c5_52 = arith.constant 5 : index
    %c0_53 = arith.constant 0 : index
    %44 = vector.load %arg8[%c5_52, %c0_53] : memref<8x32xf32, #tpu.memory_space<vmem>>, vector<1x32xf32>
    tpu.vector_store %arg8[%c5_52, %c0_53], %43 {strides = array<i32>} : memref<8x32xf32, #tpu.memory_space<vmem>>, vector<1x32xf32>,
    %c6 = arith.constant 6 : index
    %c0_54 = arith.constant 0 : index
    %45 = vector.load %arg3[%c6, %c0_54] : memref<8x128xf32, #tpu.memory_space<vmem>>, vector<1x128xf32>
    %c6_55 = arith.constant 6 : index
    %c0_56 = arith.constant 0 : index
    %c0_57 = arith.constant 0 : index
    %46 = vector.load %arg2[%c6_55, %c0_56, %c0_57] : memref<8x128x32xf32, #tpu.memory_space<vmem>>, vector<1x128x32xf32>
    %47 = vector.shape_cast %46 : vector<1x128x32xf32> to vector<128x32xf32>
    %c6_58 = arith.constant 6 : index
    %c0_59 = arith.constant 0 : index
    %48 = vector.load %arg8[%c6_58, %c0_59] : memref<8x32xf32, #tpu.memory_space<vmem>>, vector<1x32xf32>
    %cst_60 = arith.constant dense<0.000000e+00> : vector<1x32xf32>
    %49 = tpu.matmul %45, %47, %cst_60 {dimension_numbers = #tpu.dot_dimension_numbers<[1], [0], [0], [1], [0, 0, 1, 1], [], []>} : vector<1x128xf32>, vector<128x32xf32>, vector<1x32xf32> -> vector<1x32xf32>
    %50 = arith.addf %48, %49 : vector<1x32xf32>
    %c6_61 = arith.constant 6 : index
    %c0_62 = arith.constant 0 : index
    %51 = vector.load %arg8[%c6_61, %c0_62] : memref<8x32xf32, #tpu.memory_space<vmem>>, vector<1x32xf32>
    tpu.vector_store %arg8[%c6_61, %c0_62], %50 {strides = array<i32>} : memref<8x32xf32, #tpu.memory_space<vmem>>, vector<1x32xf32>,
    %c7 = arith.constant 7 : index
    %c0_63 = arith.constant 0 : index
    %52 = vector.load %arg3[%c7, %c0_63] : memref<8x128xf32, #tpu.memory_space<vmem>>, vector<1x128xf32>
    %c7_64 = arith.constant 7 : index
    %c0_65 = arith.constant 0 : index
    %c0_66 = arith.constant 0 : index
    %53 = vector.load %arg2[%c7_64, %c0_65, %c0_66] : memref<8x128x32xf32, #tpu.memory_space<vmem>>, vector<1x128x32xf32>
    %54 = vector.shape_cast %53 : vector<1x128x32xf32> to vector<128x32xf32>
    %c7_67 = arith.constant 7 : index
    %c0_68 = arith.constant 0 : index
    %55 = vector.load %arg8[%c7_67, %c0_68] : memref<8x32xf32, #tpu.memory_space<vmem>>, vector<1x32xf32>
    %cst_69 = arith.constant dense<0.000000e+00> : vector<1x32xf32>
    %56 = tpu.matmul %52, %54, %cst_69 {dimension_numbers = #tpu.dot_dimension_numbers<[1], [0], [0], [1], [0, 0, 1, 1], [], []>} : vector<1x128xf32>, vector<128x32xf32>, vector<1x32xf32> -> vector<1x32xf32>
    %57 = arith.addf %55, %56 : vector<1x32xf32>
    %c7_70 = arith.constant 7 : index
    %c0_71 = arith.constant 0 : index
    %58 = vector.load %arg8[%c7_70, %c0_71] : memref<8x32xf32, #tpu.memory_space<vmem>>, vector<1x32xf32>
    tpu.vector_store %arg8[%c7_70, %c0_71], %57 {strides = array<i32>} : memref<8x32xf32, #tpu.memory_space<vmem>>, vector<1x32xf32>,
    %c0_i32_72 = arith.constant 0 : i32
    %59 = arith.cmpi eq, %arg1, %c0_i32_72 : i32
    %60 = arith.extui %59 : i1 to i32
    %c0_i32_73 = arith.constant 0 : i32
    %61 = arith.cmpi ne, %60, %c0_i32_73 : i32
    scf.if %61 {
      %c0_74 = arith.constant 0 : index
      %c0_75 = arith.constant 0 : index
      %62 = vector.load %arg8[%c0_74, %c0_75] : memref<8x32xf32, #tpu.memory_space<vmem>>, vector<8x32xf32>
      %c0_76 = arith.constant 0 : index
      %c0_77 = arith.constant 0 : index
      %63 = vector.load %arg4[%c0_76, %c0_77] : memref<8x1xf32, #tpu.memory_space<vmem>>, vector<8x1xf32>
      %64 = vector.broadcast %63 : vector<8x1xf32> to vector<8x32xf32>
      %65 = arith.mulf %62, %64 : vector<8x32xf32>
      %c0_78 = arith.constant 0 : index
      %c0_79 = arith.constant 0 : index
      %66 = vector.load %arg5[%c0_78, %c0_79] : memref<32x128xf32, #tpu.memory_space<vmem>>, vector<32x128xf32>
      %cst_80 = arith.constant dense<0.000000e+00> : vector<8x128xf32>
      %67 = tpu.matmul %65, %66, %cst_80 {dimension_numbers = #tpu.dot_dimension_numbers<[1], [0], [0], [1], [0, 0, 1, 1], [], []>} : vector<8x32xf32>, vector<32x128xf32>, vector<8x128xf32> -> vector<8x128xf32>
      %c0_81 = arith.constant 0 : index
      %c0_82 = arith.constant 0 : index
      %68 = vector.load %arg6[%c0_81, %c0_82] : memref<1x128xf32, #tpu.memory_space<vmem>>, vector<1x128xf32>
      %69 = vector.broadcast %68 : vector<1x128xf32> to vector<8x128xf32>
      %70 = arith.addf %67, %69 : vector<8x128xf32>
      %cst_83 = arith.constant 0.000000e+00 : f32
      %71 = vector.broadcast %cst_83 : f32 to vector<8x128xf32>
      %72 = arith.maximumf %70, %71 : vector<8x128xf32>
      %c0_84 = arith.constant 0 : index
      %c0_85 = arith.constant 0 : index
      %73 = vector.load %arg7[%c0_84, %c0_85] : memref<8x128xf32, #tpu.memory_space<vmem>>, vector<8x128xf32>
      tpu.vector_store %arg7[%c0_84, %c0_85], %72 {strides = array<i32>} : memref<8x128xf32, #tpu.memory_space<vmem>>, vector<8x128xf32>,
    } else {
    }
    return
  }
  func.func @transform_0(%arg0: i32, %arg1: i32) -> (i32, i32, i32) {
    %c0_i32 = arith.constant 0 : i32
    %c0_i32_0 = arith.constant 0 : i32
    return %arg0, %arg1, %c0_i32 : i32, i32, i32
  }
  func.func @transform_1(%arg0: i32, %arg1: i32) -> (i32, i32) {
    %c0_i32 = arith.constant 0 : i32
    return %arg0, %arg1 : i32, i32
  }
  func.func @transform_2(%arg0: i32, %arg1: i32) -> (i32, i32) {
    %c0_i32 = arith.constant 0 : i32
    %c0_i32_0 = arith.constant 0 : i32
    return %arg0, %c0_i32 : i32, i32
  }
  func.func @transform_3(%arg0: i32, %arg1: i32) -> (i32, i32) {
    %c0_i32 = arith.constant 0 : i32
    %c0_i32_0 = arith.constant 0 : i32
    %c0_i32_1 = arith.constant 0 : i32
    return %c0_i32, %c0_i32_0 : i32, i32
  }
  func.func @transform_4(%arg0: i32, %arg1: i32) -> (i32, i32) {
    %c0_i32 = arith.constant 0 : i32
    %c0_i32_0 = arith.constant 0 : i32
    %c0_i32_1 = arith.constant 0 : i32
    return %c0_i32, %c0_i32_0 : i32, i32
  }
  func.func @transform_5(%arg0: i32, %arg1: i32) -> (i32, i32) {
    %c0_i32 = arith.constant 0 : i32
    %c0_i32_0 = arith.constant 0 : i32
    return %arg0, %c0_i32 : i32, i32
  }
}

</mosaic_0001>

<bundles_post_ra>
// kernel: tpu_custom_call.1
= control target key start
LH: loop header
LB: loop body
LE: loop exit
PB: predicated region body
PF: predicated region fallthrough
CT: control target
= control target key end

     0   :  { %v1641_v3 = vmov 0.0|0.0   ;;  %vm1642_vm0 = vmmov 0   ;;  %v1643_v11 = vmov 0.0   ;;  %vm25_vm1 = vcmask 261120   ;;  %s2209_s0 = inlined_call_operand.vmem [shape: f32[8,128,32], index: 0, kind: input, shape index: {}]   ;;  %s2210_s1 = inlined_call_operand.vmem [shape: f32[8,128], index: 1, kind: input, shape index: {}]   ;;  %s2211_s2 = inlined_call_operand.vmem [shape: f32[8,1], index: 2, kind: input, shape index: {}]   ;;  %s2212_s3 = inlined_call_operand.vmem [shape: f32[32,128], index: 3, kind: input, shape index: {}]   ;;  %s2213_s4 = inlined_call_operand.vmem [shape: f32[1,128], index: 4, kind: input, shape index: {}]   ;;  %s2214_s5 = inlined_call_operand.hbm [shape: f32[8,128], index: 5, kind: output, shape index: {}]  }
   0x1   :  { %v28_v0 = vld [vmem:[%s2209_s0] sm:$0xff]  ;;  %v29_v1 = vld [vmem:[%s2209_s0 + $0x8] sm:$0xff]  ;;  %1413 = vmatprep.subr.bf16.mxu0 %v1641_v3  ;;  %1437 = vmatprep.subr.bf16.mxu1 %v1641_v3  ;;  %v30_v6 = vld [vmem:[%s2209_s0 + $0x10] sm:$0xff]  ;;  %26 = vst.msk [vmem:[#allocation2] sm:$0xff] %vm25_vm1, %v1643_v11  ;;  %v1644_v18 = vmov 0  }
   0x2   :  { %v867_v2 = vld [vmem:[%s2209_s0 + $0x80] sm:$0xff]  ;;  %v1414_v4 = vpack.c.bf16 %v29_v1, %v28_v0  ;;  %v868_v5 = vld [vmem:[%s2209_s0 + $0x88] sm:$0xff]  ;;  %v31_v7 = vld [vmem:[%s2209_s0 + $0x18] sm:$0xff]  ;;  %1154 = vmatprep.mubr.msk.f32.mxu0 %vm1642_vm0, %v1643_v11  ;;  %1189 = vmatprep.mubr.msk.f32.mxu1 %vm1642_vm0, %v1643_v11 }
   0x3   :  { %v1438_v8 = vpack.c.bf16 %v868_v5, %v867_v2  ;;  %v869_v9 = vld [vmem:[%s2209_s0 + $0x90] sm:$0xff]  ;;  %v870_v10 = vld [vmem:[%s2209_s0 + $0x98] sm:$0xff]  ;;  %v1417_v12 = vpack.c.bf16 %v31_v7, %v30_v6  ;;  %v32_v14 = vld [vmem:[%s2209_s0 + $0x20] sm:$0xff]  ;;  %1616 = vset.pattern.permute.xlu0 %v1644_v18 }
   0x4   :  { %1415 = vmatpush3.bf16.msra.mxu0 %v1414_v4  ;;  %v1441_v13 = vpack.c.bf16 %v870_v10, %v869_v9  ;;  %v33_v15 = vld [vmem:[%s2209_s0 + $0x28] sm:$0xff]  ;;  %v871_v16 = vld [vmem:[%s2209_s0 + $0xa0] sm:$0xff]  ;;  %v34_v21 = vld [vmem:[%s2209_s0 + $0x30] sm:$0xff] }
   0x5   :  { %1439 = vmatpush3.bf16.msra.mxu1 %v1438_v8  ;;  %1416 = vmatprep.subr.bf16.mxu0 %v1641_v3  ;;  %v872_v17 = vld [vmem:[%s2209_s0 + $0xa8] sm:$0xff]  ;;  %v1420_v19 = vpack.c.bf16 %v33_v15, %v32_v14  ;;  %v35_v22 = vld [vmem:[%s2209_s0 + $0x38] sm:$0xff]  ;;  %v873_v23 = vld [vmem:[%s2209_s0 + $0xb0] sm:$0xff] }
   0x6   :  { %1440 = vmatprep.subr.bf16.mxu1 %v1641_v3  ;;  %v1444_v20 = vpack.c.bf16 %v872_v17, %v871_v16  ;;  %v874_v24 = vld [vmem:[%s2209_s0 + $0xb8] sm:$0xff]  ;;  %v1423_v25 = vpack.c.bf16 %v35_v22, %v34_v21  ;;  %v36_v27 = vld [vmem:[%s2209_s0 + $0x40] sm:$0xff]  ;;  %v37_v28 = vld [vmem:[%s2209_s0 + $0x48] sm:$0xff] }
   0x7   :  { %v1447_v26 = vpack.c.bf16 %v874_v24, %v873_v23  ;;  %v875_v29 = vld [vmem:[%s2209_s0 + $0xc0] sm:$0xff]  ;;  %v876_v30 = vld [vmem:[%s2209_s0 + $0xc8] sm:$0xff]  ;;  %v1426_v31 = vpack.c.bf16 %v37_v28, %v36_v27  ;;  %v38_v33 = vld [vmem:[%s2209_s0 + $0x50] sm:$0xff] }
   0x8   :  { %1418 = vmatpush3.bf16.msra.mxu0 %v1417_v12  ;;  %v1450_v32 = vpack.c.bf16 %v876_v30, %v875_v29  ;;  %v39_v34 = vld [vmem:[%s2209_s0 + $0x58] sm:$0xff]  ;;  %v877_v35 = vld [vmem:[%s2209_s0 + $0xd0] sm:$0xff]  ;;  %v40_v39 = vld [vmem:[%s2209_s0 + $0x60] sm:$0xff] }
   0x9   :  { %1442 = vmatpush3.bf16.msra.mxu1 %v1441_v13  ;;  %1419 = vmatprep.subr.bf16.mxu0 %v1641_v3  ;;  %v878_v36 = vld [vmem:[%s2209_s0 + $0xd8] sm:$0xff]  ;;  %v1429_v37 = vpack.c.bf16 %v39_v34, %v38_v33  ;;  %v41_v40 = vld [vmem:[%s2209_s0 + $0x68] sm:$0xff]  ;;  %v879_v41 = vld [vmem:[%s2209_s0 + $0xe0] sm:$0xff] }
   0xa   :  { %1443 = vmatprep.subr.bf16.mxu1 %v1641_v3  ;;  %v1453_v38 = vpack.c.bf16 %v878_v36, %v877_v35  ;;  %v880_v42 = vld [vmem:[%s2209_s0 + $0xe8] sm:$0xff]  ;;  %v1432_v43 = vpack.c.bf16 %v41_v40, %v40_v39  ;;  %v42_v45 = vld [vmem:[%s2209_s0 + $0x70] sm:$0xff]  ;;  %v43_v46 = vld [vmem:[%s2209_s0 + $0x78] sm:$0xff] }
   0xb   :  { %v1456_v44 = vpack.c.bf16 %v880_v42, %v879_v41  ;;  %v881_v47 = vld [vmem:[%s2209_s0 + $0xf0] sm:$0xff]  ;;  %v882_v48 = vld [vmem:[%s2209_s0 + $0xf8] sm:$0xff]  ;;  %v1435_v49 = vpack.c.bf16 %v43_v46, %v42_v45  ;;  %v883_v51 = vld [vmem:[%s2209_s0 + $0x100] sm:$0xff] }
   0xc   :  { %1421 = vmatpush3.bf16.msra.mxu0 %v1420_v19  ;;  %v1459_v50 = vpack.c.bf16 %v882_v48, %v881_v47  ;;  %v884_v52 = vld [vmem:[%s2209_s0 + $0x108] sm:$0xff]  ;;  %v899_v53 = vld [vmem:[%s2209_s0 + $0x180] sm:$0xff]  ;;  %v885_v59 = vld [vmem:[%s2209_s0 + $0x110] sm:$0xff] }
   0xd   :  { %1445 = vmatpush3.bf16.msra.mxu1 %v1444_v20  ;;  %1422 = vmatprep.subr.bf16.mxu0 %v1641_v3  ;;  %v900_v54 = vld [vmem:[%s2209_s0 + $0x188] sm:$0xff]  ;;  %v27_v55 = vld [vmem:[%s2210_s1] sm:$0x1]  ;;  %v1462_v56 = vpack.c.bf16 %v884_v52, %v883_v51  ;;  %v118_v57 = vld [vmem:[%s2210_s1 + $0x1] sm:$0x1] }
   0xe   :  { %1446 = vmatprep.subr.bf16.mxu1 %v1641_v3  ;;  %v1486_v58 = vpack.c.bf16 %v900_v54, %v899_v53  ;;  %v886_v60 = vld [vmem:[%s2209_s0 + $0x118] sm:$0xff]  ;;  %v901_v61 = vld [vmem:[%s2209_s0 + $0x190] sm:$0xff]  ;;  %v887_v1 = vld [vmem:[%s2209_s0 + $0x120] sm:$0xff] }
   0xf   :  { %v902_v62 = vld [vmem:[%s2209_s0 + $0x198] sm:$0xff]  ;;  %v1465_v63 = vpack.c.bf16 %v886_v60, %v885_v59  ;;  %v888_v2 = vld [vmem:[%s2209_s0 + $0x128] sm:$0xff]  ;;  %v903_v4 = vld [vmem:[%s2209_s0 + $0x1a0] sm:$0xff] }
  0x10   :  { %1424 = vmatpush3.bf16.msra.mxu0 %v1423_v25  ;;  %v1489_v0 = vpack.c.bf16 %v902_v62, %v901_v61  ;;  %v904_v5 = vld [vmem:[%s2209_s0 + $0x1a8] sm:$0xff]  ;;  %v1468_v6 = vpack.c.bf16 %v888_v2, %v887_v1  ;;  %v889_v8 = vld [vmem:[%s2209_s0 + $0x130] sm:$0xff]  ;;  %v890_v9 = vld [vmem:[%s2209_s0 + $0x138] sm:$0xff] }
  0x11   :  { %1448 = vmatpush3.bf16.msra.mxu1 %v1447_v26  ;;  %1425 = vmatprep.subr.bf16.mxu0 %v1641_v3  ;;  %v1492_v7 = vpack.c.bf16 %v904_v5, %v903_v4  ;;  %v905_v10 = vld [vmem:[%s2209_s0 + $0x1b0] sm:$0xff]  ;;  %v906_v12 = vld [vmem:[%s2209_s0 + $0x1b8] sm:$0xff]  ;;  %v1471_v13 = vpack.c.bf16 %v890_v9, %v889_v8  ;;  %v891_v15 = vld [vmem:[%s2209_s0 + $0x140] sm:$0xff] }
  0x12   :  { %1449 = vmatprep.subr.bf16.mxu1 %v1641_v3  ;;  %v1495_v14 = vpack.c.bf16 %v906_v12, %v905_v10  ;;  %v892_v16 = vld [vmem:[%s2209_s0 + $0x148] sm:$0xff]  ;;  %v907_v17 = vld [vmem:[%s2209_s0 + $0x1c0] sm:$0xff] }
  0x13   :  { %v908_v18 = vld [vmem:[%s2209_s0 + $0x1c8] sm:$0xff]  ;;  %v759_v19 = vld [vmem:[%s2211_s2] sm:$0xff] }
  0x14   :  { %1427 = vmatpush3.bf16.msra.mxu0 %v1426_v31  ;;  %762 = vperm.xlu0 %1616, %v759_v19  }
  0x15   :  { %1451 = vmatpush3.bf16.msra.mxu1 %v1450_v32  ;;  %1428 = vmatprep.subr.bf16.mxu0 %v1641_v3 }
  0x16   :  { %1452 = vmatprep.subr.bf16.mxu1 %v1641_v3 }
  0x18   :  { %1430 = vmatpush3.bf16.msra.mxu0 %v1429_v37 }
  0x19   :  { %1454 = vmatpush3.bf16.msra.mxu1 %v1453_v38  ;;  %1431 = vmatprep.subr.bf16.mxu0 %v1641_v3 }
  0x1a   :  { %1455 = vmatprep.subr.bf16.mxu1 %v1641_v3 }
  0x1c   :  { %1433 = vmatpush3.bf16.msra.mxu0 %v1432_v43 }
  0x1d   :  { %1457 = vmatpush3.bf16.msra.mxu1 %v1456_v44  ;;  %1434 = vmatprep.subr.bf16.mxu0 %v1641_v3 }
  0x1e   :  { %1458 = vmatprep.subr.bf16.mxu1 %v1641_v3 }
  0x20   :  { %1436 = vmatpush3.bf16.msra.mxu0 %v1435_v49 }
  0x21   :  { %1460 = vmatpush3.bf16.msra.mxu1 %v1459_v50  ;;  %1461 = vmatprep.subr.bf16.mxu0 %v1641_v3 }
  0x22   :  { %1485 = vmatprep.subr.bf16.mxu1 %v1641_v3 }
  0x23   :  { %1155 = vmatmul.mubr.f32.vlgmr.msra.gmra.mrb[0].mxu0 %v27_v55 }
  0x24   :  { %1190 = vmatmul.mubr.f32.vlgmr.msra.gmra.mrb[0].mxu1 %v118_v57  ;;  %1463 = vmatpush3.bf16.msra.mxu0 %v1462_v56 }
  0x25   :  { %1487 = vmatpush3.bf16.msra.mxu1 %v1486_v58  ;;  %1464 = vmatprep.subr.bf16.mxu0 %v1641_v3 }
  0x26   :  { %1488 = vmatprep.subr.bf16.mxu1 %v1641_v3  ;;  %1224 = vmatprep.mubr.msk.f32.mxu0 %vm1642_vm0, %v1643_v11 }
  0x27   :  { %1259 = vmatprep.mubr.msk.f32.mxu1 %vm1642_vm0, %v1643_v11 }
  0x28   :  { %1466 = vmatpush3.bf16.msra.mxu0 %v1465_v63 }
  0x29   :  { %1490 = vmatpush3.bf16.msra.mxu1 %v1489_v0  ;;  %1467 = vmatprep.subr.bf16.mxu0 %v1641_v3 }
  0x2a   :  { %1491 = vmatprep.subr.bf16.mxu1 %v1641_v3 }
  0x2c   :  { %1469 = vmatpush3.bf16.msra.mxu0 %v1468_v6 }
  0x2d   :  { %1493 = vmatpush3.bf16.msra.mxu1 %v1492_v7  ;;  %1470 = vmatprep.subr.bf16.mxu0 %v1641_v3 }
  0x2e   :  { %1494 = vmatprep.subr.bf16.mxu1 %v1641_v3 }
  0x2f   :  { %10 = vsyncpa [#allocation4], 0  ;;  %v1474_v20 = vpack.c.bf16 %v892_v16, %v891_v15  ;;  %v1498_v21 = vpack.c.bf16 %v908_v18, %v907_v17  ;;  %v893_v22 = vld [vmem:[%s2209_s0 + $0x150] sm:$0xff]  ;;  %v894_v23 = vld [vmem:[%s2209_s0 + $0x158] sm:$0xff]  ;;  %vm116_vm2 = vcmask 253952   ;;  %s1645_s17 = smov [#allocation3]  }
  0x30   :  { %1472 = vmatpush3.bf16.msra.mxu0 %v1471_v13  ;;  %v909_v24 = vld [vmem:[%s2209_s0 + $0x1d0] sm:$0xff]  ;;  %v910_v25 = vld [vmem:[%s2209_s0 + $0x1d8] sm:$0xff]  ;;  %v1477_v26 = vpack.c.bf16 %v894_v23, %v893_v22  ;;  %v895_v28 = vld [vmem:[%s2209_s0 + $0x160] sm:$0xff]  ;;  %s859_s18 = sshll.u32 %s1645_s17, 4  ;;  %s860_s18 = int_to_ptr.vmem [resolvable:$true] %s859_s18 }
  0x31   :  { %1496 = vmatpush3.bf16.msra.mxu1 %v1495_v14  ;;  %1473 = vmatprep.subr.bf16.mxu0 %v1641_v3  ;;  %v1501_v27 = vpack.c.bf16 %v910_v25, %v909_v24  ;;  %v896_v29 = vld [vmem:[%s2209_s0 + $0x168] sm:$0xff]  ;;  %v911_v30 = vld [vmem:[%s2209_s0 + $0x1e0] sm:$0xff]  ;;  %v897_v34 = vld [vmem:[%s2209_s0 + $0x170] sm:$0xff]  ;;  %s1617_s19 = scalar_lea.vmem %s860_s18, 128  ;;  %p1622_p1 = scmp.lt.s32.totalorder %s860_s18, %s860_s18 }
  0x32   :  { %1497 = vmatprep.subr.bf16.mxu1 %v1641_v3  ;;  %v912_v31 = vld [vmem:[%s2209_s0 + $0x1e8] sm:$0xff]  ;;  %v1480_v32 = vpack.c.bf16 %v896_v29, %v895_v28  ;;  %v898_v35 = vld [vmem:[%s2209_s0 + $0x178] sm:$0xff]  ;;  %v913_v36 = vld [vmem:[%s2209_s0 + $0x1f0] sm:$0xff]  ;;  %p1618_p0 = scmp.ne.s32.totalorder %s860_s18, %s1617_s19  ;;  %p1623_p2 = scmp.lt.s32.totalorder %s1617_s19, %s1617_s19 }
  0x33   :  { %v1504_v33 = vpack.c.bf16 %v912_v31, %v911_v30  ;;  %v914_v37 = vld [vmem:[%s2209_s0 + $0x1f8] sm:$0xff]  ;;  %v1483_v38 = vpack.c.bf16 %v898_v35, %v897_v34  ;;  %v915_v40 = vld [vmem:[%s2209_s0 + $0x200] sm:$0xff]  ;;  %v916_v41 = vld [vmem:[%s2209_s0 + $0x208] sm:$0xff] }
  0x34   :  { %1475 = vmatpush3.bf16.msra.mxu0 %v1474_v20  ;;  %v1507_v39 = vpack.c.bf16 %v914_v37, %v913_v36  ;;  %v931_v42 = vld [vmem:[%s2209_s0 + $0x280] sm:$0xff]  ;;  %v932_v43 = vld [vmem:[%s2209_s0 + $0x288] sm:$0xff]  ;;  %v1510_v45 = vpack.c.bf16 %v916_v41, %v915_v40  ;;  %v917_v48 = vld [vmem:[%s2209_s0 + $0x210] sm:$0xff]  ;;  %p1624_p3 = por %p1623_p2, %p1622_p1 }
  0x35   :  { %1499 = vmatpush3.bf16.msra.mxu1 %v1498_v21  ;;  %1476 = vmatprep.subr.bf16.mxu0 %v1641_v3  ;;  %v209_v44 = vld [vmem:[%s2210_s1 + $0x2] sm:$0x1]  ;;  %v300_v46 = vld [vmem:[%s2210_s1 + $0x3] sm:$0x1]  ;;  %v1534_v47 = vpack.c.bf16 %v932_v43, %v931_v42  ;;  %v918_v49 = vld [vmem:[%s2209_s0 + $0x218] sm:$0xff] }
  0x36   :  { %1500 = vmatprep.subr.bf16.mxu1 %v1641_v3  ;;  %v933_v50 = vld [vmem:[%s2209_s0 + $0x290] sm:$0xff]  ;;  %v934_v51 = vld [vmem:[%s2209_s0 + $0x298] sm:$0xff]  ;;  %v1513_v52 = vpack.c.bf16 %v918_v49, %v917_v48  ;;  %v919_v54 = vld [vmem:[%s2209_s0 + $0x220] sm:$0xff]  ;;  %p1625_p4 = pnand %p1624_p3, %p1618_p0 }
  0x37   :  { %v1537_v53 = vpack.c.bf16 %v934_v51, %v933_v50  ;;  %v920_v55 = vld [vmem:[%s2209_s0 + $0x228] sm:$0xff]  ;;  %v935_v56 = vld [vmem:[%s2209_s0 + $0x2a0] sm:$0xff]  ;;  %v921_v60 = vld [vmem:[%s2209_s0 + $0x230] sm:$0xff] }
  0x38   :  { %1478 = vmatpush3.bf16.msra.mxu0 %v1477_v26  ;;  %v936_v57 = vld [vmem:[%s2209_s0 + $0x2a8] sm:$0xff]  ;;  %v1516_v58 = vpack.c.bf16 %v920_v55, %v919_v54  ;;  %v922_v61 = vld [vmem:[%s2209_s0 + $0x238] sm:$0xff]  ;;  %v937_v62 = vld [vmem:[%s2209_s0 + $0x2b0] sm:$0xff] }
  0x39   :  { %1502 = vmatpush3.bf16.msra.mxu1 %v1501_v27  ;;  %1479 = vmatprep.subr.bf16.mxu0 %v1641_v3  ;;  %v1540_v59 = vpack.c.bf16 %v936_v57, %v935_v56  ;;  %v938_v63 = vld [vmem:[%s2209_s0 + $0x2b8] sm:$0xff]  ;;  %v1519_v0 = vpack.c.bf16 %v922_v61, %v921_v60  ;;  %v923_v2 = vld [vmem:[%s2209_s0 + $0x240] sm:$0xff]  ;;  %v924_v4 = vld [vmem:[%s2209_s0 + $0x248] sm:$0xff] }
  0x3a   :  { %1503 = vmatprep.subr.bf16.mxu1 %v1641_v3  ;;  %v1543_v1 = vpack.c.bf16 %v938_v63, %v937_v62  ;;  %v939_v5 = vld [vmem:[%s2209_s0 + $0x2c0] sm:$0xff]  ;;  %v940_v6 = vld [vmem:[%s2209_s0 + $0x2c8] sm:$0xff]  ;;  %v1522_v7 = vpack.c.bf16 %v924_v4, %v923_v2  ;;  %v925_v9 = vld [vmem:[%s2209_s0 + $0x250] sm:$0xff] }
  0x3b   :  { %v1546_v8 = vpack.c.bf16 %v940_v6, %v939_v5  ;;  %v926_v10 = vld [vmem:[%s2209_s0 + $0x258] sm:$0xff]  ;;  %v941_v12 = vld [vmem:[%s2209_s0 + $0x2d0] sm:$0xff]  ;;  %v927_v16 = vld [vmem:[%s2209_s0 + $0x260] sm:$0xff] }
  0x3c   :  { %1481 = vmatpush3.bf16.msra.mxu0 %v1480_v32  ;;  %v942_v13 = vld [vmem:[%s2209_s0 + $0x2d8] sm:$0xff]  ;;  %v1525_v14 = vpack.c.bf16 %v926_v10, %v925_v9  ;;  %v928_v17 = vld [vmem:[%s2209_s0 + $0x268] sm:$0xff]  ;;  %v943_v18 = vld [vmem:[%s2209_s0 + $0x2e0] sm:$0xff] }
  0x3d   :  { %1505 = vmatpush3.bf16.msra.mxu1 %v1504_v33  ;;  %1482 = vmatprep.subr.bf16.mxu0 %v1641_v3  ;;  %v1549_v15 = vpack.c.bf16 %v942_v13, %v941_v12  ;;  %v944_v19 = vld [vmem:[%s2209_s0 + $0x2e8] sm:$0xff]  ;;  %v1528_v20 = vpack.c.bf16 %v928_v17, %v927_v16  ;;  %v929_v22 = vld [vmem:[%s2209_s0 + $0x270] sm:$0xff]  ;;  %v930_v23 = vld [vmem:[%s2209_s0 + $0x278] sm:$0xff] }
  0x3e   :  { %1506 = vmatprep.subr.bf16.mxu1 %v1641_v3  ;;  %v1552_v21 = vpack.c.bf16 %v944_v19, %v943_v18  ;;  %v945_v24 = vld [vmem:[%s2209_s0 + $0x2f0] sm:$0xff]  ;;  %v946_v25 = vld [vmem:[%s2209_s0 + $0x2f8] sm:$0xff]  ;;  %v1531_v26 = vpack.c.bf16 %v930_v23, %v929_v22  ;;  %v947_v28 = vld [vmem:[%s2209_s0 + $0x300] sm:$0xff] }
  0x3f   :  { %v1555_v27 = vpack.c.bf16 %v946_v25, %v945_v24  ;;  %v948_v29 = vld [vmem:[%s2209_s0 + $0x308] sm:$0xff]  ;;  %v963_v30 = vld [vmem:[%s2209_s0 + $0x380] sm:$0xff]  ;;  %v949_v36 = vld [vmem:[%s2209_s0 + $0x310] sm:$0xff] }
  0x40   :  { %1484 = vmatpush3.bf16.msra.mxu0 %v1483_v38  ;;  %v964_v31 = vld [vmem:[%s2209_s0 + $0x388] sm:$0xff]  ;;  %v391_v32 = vld [vmem:[%s2210_s1 + $0x4] sm:$0x1]  ;;  %v1558_v33 = vpack.c.bf16 %v948_v29, %v947_v28  ;;  %v482_v34 = vld [vmem:[%s2210_s1 + $0x5] sm:$0x1] }
  0x41   :  { %1508 = vmatpush3.bf16.msra.mxu1 %v1507_v39  ;;  %1509 = vmatprep.subr.bf16.mxu0 %v1641_v3  ;;  %v1582_v35 = vpack.c.bf16 %v964_v31, %v963_v30  ;;  %v950_v37 = vld [vmem:[%s2209_s0 + $0x318] sm:$0xff]  ;;  %v965_v38 = vld [vmem:[%s2209_s0 + $0x390] sm:$0xff]  ;;  %v951_v42 = vld [vmem:[%s2209_s0 + $0x320] sm:$0xff] }
  0x42   :  { %1533 = vmatprep.subr.bf16.mxu1 %v1641_v3  ;;  %v966_v39 = vld [vmem:[%s2209_s0 + $0x398] sm:$0xff]  ;;  %v1561_v40 = vpack.c.bf16 %v950_v37, %v949_v36  ;;  %v952_v43 = vld [vmem:[%s2209_s0 + $0x328] sm:$0xff]  ;;  %v953_v48 = vld [vmem:[%s2209_s0 + $0x330] sm:$0xff] }
  0x43   :  { %1225 = vmatmul.mubr.f32.vlgmr.msra.gmra.mrb[2].mxu0 %v209_v44  ;;  %v1585_v41 = vpack.c.bf16 %v966_v39, %v965_v38  ;;  %v967_v44 = vld [vmem:[%s2209_s0 + $0x3a0] sm:$0xff]  ;;  %v954_v49 = vld [vmem:[%s2209_s0 + $0x338] sm:$0xff]  ;;  %v969_v50 = vld [vmem:[%s2209_s0 + $0x3b0] sm:$0xff] }
  0x44   :  { %1260 = vmatmul.mubr.f32.vlgmr.msra.gmra.mrb[2].mxu1 %v300_v46  ;;  %1511 = vmatpush3.bf16.msra.mxu0 %v1510_v45  ;;  %v968_v45 = vld [vmem:[%s2209_s0 + $0x3a8] sm:$0xff]  ;;  %v1564_v46 = vpack.c.bf16 %v952_v43, %v951_v42  ;;  %v970_v51 = vld [vmem:[%s2209_s0 + $0x3b8] sm:$0xff]  ;;  %v955_v54 = vld [vmem:[%s2209_s0 + $0x340] sm:$0xff] }
  0x45   :  { %1535 = vmatpush3.bf16.msra.mxu1 %v1534_v47  ;;  %1512 = vmatprep.subr.bf16.mxu0 %v1641_v3  ;;  %v1588_v47 = vpack.c.bf16 %v968_v45, %v967_v44  ;;  %v956_v55 = vld [vmem:[%s2209_s0 + $0x348] sm:$0xff]  ;;  %v971_v56 = vld [vmem:[%s2209_s0 + $0x3c0] sm:$0xff]  ;;  %v957_v60 = vld [vmem:[%s2209_s0 + $0x350] sm:$0xff] }
  0x46   :  { %1536 = vmatprep.subr.bf16.mxu1 %v1641_v3  ;;  %1294 = vmatprep.mubr.msk.f32.mxu0 %vm1642_vm0, %v1643_v11  ;;  %v972_v57 = vld [vmem:[%s2209_s0 + $0x3c8] sm:$0xff]  ;;  %v958_v61 = vld [vmem:[%s2209_s0 + $0x358] sm:$0xff]  ;;  %v973_v62 = vld [vmem:[%s2209_s0 + $0x3d0] sm:$0xff] }
  0x47   :  { %1329 = vmatprep.mubr.msk.f32.mxu1 %vm1642_vm0, %v1643_v11  ;;  %v974_v63 = vld [vmem:[%s2209_s0 + $0x3d8] sm:$0xff]  ;;  %v959_v2 = vld [vmem:[%s2209_s0 + $0x360] sm:$0xff]  ;;  %v960_v4 = vld [vmem:[%s2209_s0 + $0x368] sm:$0xff] }
  0x48   :  { %1514 = vmatpush3.bf16.msra.mxu0 %v1513_v52  ;;  %v1567_v52 = vpack.c.bf16 %v954_v49, %v953_v48  ;;  %v975_v5 = vld [vmem:[%s2209_s0 + $0x3e0] sm:$0xff]  ;;  %v976_v6 = vld [vmem:[%s2209_s0 + $0x3e8] sm:$0xff]  ;;  %v961_v9 = vld [vmem:[%s2209_s0 + $0x370] sm:$0xff] }
  0x49   :  { %1538 = vmatpush3.bf16.msra.mxu1 %v1537_v53  ;;  %1515 = vmatprep.subr.bf16.mxu0 %v1641_v3  ;;  %v1591_v53 = vpack.c.bf16 %v970_v51, %v969_v50  ;;  %v962_v10 = vld [vmem:[%s2209_s0 + $0x378] sm:$0xff]  ;;  %v977_v12 = vld [vmem:[%s2209_s0 + $0x3f0] sm:$0xff]  ;;  %v573_v16 = vld [vmem:[%s2210_s1 + $0x6] sm:$0x1] }
  0x4a   :  { %1539 = vmatprep.subr.bf16.mxu1 %v1641_v3  ;;  %v978_v13 = vld [vmem:[%s2209_s0 + $0x3f8] sm:$0xff]  ;;  %v664_v17 = vld [vmem:[%s2210_s1 + $0x7] sm:$0x1]  ;;  %v767_v19 = vld [vmem:[%s2212_s3 + $0x8] sm:$0xff] }
  0x4b   :  { %v766_v18 = vld [vmem:[%s2212_s3] sm:$0xff] }
  0x4c   :  { %1517 = vmatpush3.bf16.msra.mxu0 %v1516_v58  ;;  %v1570_v58 = vpack.c.bf16 %v956_v55, %v955_v54  ;;  %v44_v23 = vld [vmem:[#allocation2] sm:$0x1]  ;;  %v136_v24 = vld [vmem:[#allocation2 + $0x1] sm:$0x1]  ;;  %v318_v31 = vld [vmem:[#allocation2 + $0x3] sm:$0x1] }
  0x4d   :  { %1541 = vmatpush3.bf16.msra.mxu1 %v1540_v59  ;;  %1518 = vmatprep.subr.bf16.mxu0 %v1641_v3  ;;  %v1594_v59 = vpack.c.bf16 %v972_v57, %v971_v56  ;;  %v409_v38 = vld [vmem:[#allocation2 + $0x4] sm:$0x1]  ;;  %v500_v39 = vld [vmem:[#allocation2 + $0x5] sm:$0x1]  ;;  %v979_v57 = vld [vmem:[%s2213_s4] ss:$0 sm:$0xff] }
  0x4e   :  { %1542 = vmatprep.subr.bf16.mxu1 %v1641_v3 }
  0x50   :  { %1520 = vmatpush3.bf16.msra.mxu0 %v1519_v0  ;;  %v1573_v0 = vpack.c.bf16 %v958_v61, %v957_v60 }
  0x51   :  { %1544 = vmatpush3.bf16.msra.mxu1 %v1543_v1  ;;  %1521 = vmatprep.subr.bf16.mxu0 %v1641_v3  ;;  %v1597_v1 = vpack.c.bf16 %v974_v63, %v973_v62 }
  0x52   :  { %1545 = vmatprep.subr.bf16.mxu1 %v1641_v3 }
  0x54   :  { %1523 = vmatpush3.bf16.msra.mxu0 %v1522_v7  ;;  %v1576_v7 = vpack.c.bf16 %v960_v4, %v959_v2 }
  0x55   :  { %1547 = vmatpush3.bf16.msra.mxu1 %v1546_v8  ;;  %1524 = vmatprep.subr.bf16.mxu0 %v1641_v3  ;;  %v1600_v8 = vpack.c.bf16 %v976_v6, %v975_v5 }
  0x56   :  { %1548 = vmatprep.subr.bf16.mxu1 %v1641_v3 }
  0x58   :  { %1526 = vmatpush3.bf16.msra.mxu0 %v1525_v14  ;;  %v1579_v14 = vpack.c.bf16 %v962_v10, %v961_v9 }
  0x59   :  { %1550 = vmatpush3.bf16.msra.mxu1 %v1549_v15  ;;  %1527 = vmatprep.subr.bf16.mxu0 %v1641_v3  ;;  %v1603_v15 = vpack.c.bf16 %v978_v13, %v977_v12 }
  0x5a   :  { %1551 = vmatprep.subr.bf16.mxu1 %v1641_v3 }
  0x5c   :  { %1529 = vmatpush3.bf16.msra.mxu0 %v1528_v20  ;;  %v1606_v20 = vpack.c.bf16 %v767_v19, %v766_v18 }
  0x5d   :  { %1553 = vmatpush3.bf16.msra.mxu1 %v1552_v21  ;;  %1530 = vmatprep.subr.bf16.mxu0 %v1641_v3  ;;  %v768_v21 = vld [vmem:[%s2212_s3 + $0x10] sm:$0xff] }
  0x5e   :  { %1554 = vmatprep.subr.bf16.mxu1 %v1641_v3 }
  0x60   :  { %1532 = vmatpush3.bf16.msra.mxu0 %v1531_v26 }
  0x61   :  { %1556 = vmatpush3.bf16.msra.mxu1 %v1555_v27  ;;  %1557 = vmatprep.subr.bf16.mxu0 %v1641_v3 }
  0x62   :  { %1581 = vmatprep.subr.bf16.mxu1 %v1641_v3 }
  0x63   :  { %1295 = vmatmul.mubr.f32.vlgmr.msra.gmra.mrb[4].mxu0 %v391_v32 }
  0x64   :  { %1330 = vmatmul.mubr.f32.vlgmr.msra.gmra.mrb[4].mxu1 %v482_v34  ;;  %1559 = vmatpush3.bf16.msra.mxu0 %v1558_v33 }
  0x65   :  { %1583 = vmatpush3.bf16.msra.mxu1 %v1582_v35  ;;  %1560 = vmatprep.subr.bf16.mxu0 %v1641_v3 }
  0x66   :  { %1584 = vmatprep.subr.bf16.mxu1 %v1641_v3  ;;  %1364 = vmatprep.mubr.msk.f32.mxu0 %vm1642_vm0, %v1643_v11 }
  0x67   :  { %1399 = vmatprep.mubr.msk.f32.mxu1 %vm1642_vm0, %v1643_v11 }
  0x68   :  { %1562 = vmatpush3.bf16.msra.mxu0 %v1561_v40 }
  0x69   :  { %1586 = vmatpush3.bf16.msra.mxu1 %v1585_v41  ;;  %1563 = vmatprep.subr.bf16.mxu0 %v1641_v3 }
  0x6a   :  { %1587 = vmatprep.subr.bf16.mxu1 %v1641_v3 }
  0x6c   :  { %1565 = vmatpush3.bf16.msra.mxu0 %v1564_v46  ;;  %v591_v46 = vld [vmem:[#allocation2 + $0x6] sm:$0x1] }
  0x6d   :  { %1589 = vmatpush3.bf16.msra.mxu1 %v1588_v47  ;;  %1566 = vmatprep.subr.bf16.mxu0 %v1641_v3  ;;  %v682_v47 = vld [vmem:[#allocation2 + $0x7] sm:$0x1] }
  0x6e   :  { %1590 = vmatprep.subr.bf16.mxu1 %v1641_v3 }
  0x70   :  { %1568 = vmatpush3.bf16.msra.mxu0 %v1567_v52 }
  0x71   :  { %1592 = vmatpush3.bf16.msra.mxu1 %v1591_v53  ;;  %1569 = vmatprep.subr.bf16.mxu0 %v1641_v3 }
  0x72   :  { %1593 = vmatprep.subr.bf16.mxu1 %v1641_v3 }
  0x74   :  { %1571 = vmatpush3.bf16.msra.mxu0 %v1570_v58 }
  0x75   :  { %1595 = vmatpush3.bf16.msra.mxu1 %v1594_v59  ;;  %1572 = vmatprep.subr.bf16.mxu0 %v1641_v3 }
  0x76   :  { %1596 = vmatprep.subr.bf16.mxu1 %v1641_v3 }
  0x78   :  { %1574 = vmatpush3.bf16.msra.mxu0 %v1573_v0 }
  0x79   :  { %1598 = vmatpush3.bf16.msra.mxu1 %v1597_v1  ;;  %1575 = vmatprep.subr.bf16.mxu0 %v1641_v3 }
  0x7a   :  { %1599 = vmatprep.subr.bf16.mxu1 %v1641_v3 }
  0x7c   :  { %1577 = vmatpush3.bf16.msra.mxu0 %v1576_v7 }
  0x7d   :  { %1601 = vmatpush3.bf16.msra.mxu1 %v1600_v8  ;;  %1578 = vmatprep.subr.bf16.mxu0 %v1641_v3 }
  0x7e   :  { %1602 = vmatprep.subr.bf16.mxu1 %v1641_v3 }
  0x80   :  { %1580 = vmatpush3.bf16.msra.mxu0 %v1579_v14 }
  0x81   :  { %1604 = vmatpush3.bf16.msra.mxu1 %v1603_v15  ;;  %1605 = vmatprep.subr.bf16.mxu0 %v1641_v3 }
  0x83   :  { %1365 = vmatmul.mubr.f32.vlgmr.msra.gmra.mrb[6].mxu0 %v573_v16 }
  0x84   :  { %1400 = vmatmul.mubr.f32.vlgmr.msra.gmra.mrb[6].mxu1 %v664_v17  ;;  %1410 = vmatprep.mubr.msk.f32.mxu0 %vm1642_vm0, %v1643_v11  ;;  %v769_v11 = vld [vmem:[%s2212_s3 + $0x18] sm:$0xff] }
  0x85   :  { %1607 = vmatpush3.bf16.msra.mxu0 %v1606_v20  ;;  %v1609_v22 = vpack.c.bf16 %v769_v11, %v768_v21 }
  0x86   :  { %1608 = vmatprep.subr.bf16.mxu0 %v1641_v3  ;;  %v227_v3 = vld [vmem:[#allocation2 + $0x2] sm:$0x1] }
  0x89   :  { %1610 = vmatpush3.bf16.msra.mxu0 %v1609_v22 }
  0x93   :  { %v763_v54 = vpop.permute.xlu0 %762 }
  0xf6   :  { %v111_v25 = vpop.f32.mrb[0].mxu0 }
  0xf7   :  { %v115_v26 = vadd.f32 %v111_v25, %v44_v23  ;;  %v203_v27 = vpop.f32.mrb[0].mxu1  ;;  %v1156_v28 = vpop.f32.mrb[1].mxu0 }
  0xf8   :  { %v207_v29 = vadd.f32 %v203_v27, %v136_v24  ;;  %v1191_v30 = vpop.f32.mrb[1].mxu1 }
  0xf9   :  { %117 = vst.msk [vmem:[#allocation2] sm:$0x1] %vm116_vm2, %v115_v26 }
  0xfa   :  { %208 = vst.msk [vmem:[#allocation2 + $0x1] sm:$0x1] %vm116_vm2, %v207_v29 }
 0x116   :  { %v294_v32 = vpop.f32.mrb[2].mxu0 }
 0x117   :  { %v298_v33 = vadd.f32 %v294_v32, %v227_v3  ;;  %v385_v34 = vpop.f32.mrb[2].mxu1  ;;  %v1226_v35 = vpop.f32.mrb[3].mxu0 }
 0x118   :  { %v389_v36 = vadd.f32 %v385_v34, %v318_v31  ;;  %v1261_v37 = vpop.f32.mrb[3].mxu1 }
 0x119   :  { %299 = vst.msk [vmem:[#allocation2 + $0x2] sm:$0x1] %vm116_vm2, %v298_v33 }
 0x11a   :  { %390 = vst.msk [vmem:[#allocation2 + $0x3] sm:$0x1] %vm116_vm2, %v389_v36 }
 0x136   :  { %v476_v40 = vpop.f32.mrb[4].mxu0 }
 0x137   :  { %v480_v41 = vadd.f32 %v476_v40, %v409_v38  ;;  %v567_v42 = vpop.f32.mrb[4].mxu1  ;;  %v1296_v43 = vpop.f32.mrb[5].mxu0 }
 0x138   :  { %v571_v44 = vadd.f32 %v567_v42, %v500_v39  ;;  %v1331_v45 = vpop.f32.mrb[5].mxu1 }
 0x139   :  { %481 = vst.msk [vmem:[#allocation2 + $0x4] sm:$0x1] %vm116_vm2, %v480_v41 }
 0x13a   :  { %572 = vst.msk [vmem:[#allocation2 + $0x5] sm:$0x1] %vm116_vm2, %v571_v44 }
 0x156   :  { %v658_v48 = vpop.f32.mrb[6].mxu0 }
 0x157   :  { %v662_v49 = vadd.f32 %v658_v48, %v591_v46  ;;  %v749_v50 = vpop.f32.mrb[6].mxu1  ;;  %v1366_v51 = vpop.f32.mrb[7].mxu0 }
 0x158   :  { %v753_v52 = vadd.f32 %v749_v50, %v682_v47  ;;  %v1401_v53 = vpop.f32.mrb[7].mxu1 }
 0x159   :  { %663 = vst.msk [vmem:[#allocation2 + $0x6] sm:$0x1] %vm116_vm2, %v662_v49 }
 0x15a   :  { %754 = vst.msk [vmem:[#allocation2 + $0x7] sm:$0x1] %vm116_vm2, %v753_v52 }
 0x161   :  { %v758_v55 = vld [vmem:[#allocation2] sm:$0xff] }
 0x162   :  { %v765_v56 = vmul.f32 %v763_v54, %v758_v55 }
 0x164   :  { %1411 = vmatmul.mubr.msk.f32.vlgmr.msra.gmra.mrb[8].mxu0 %vm25_vm1, %v765_v56 }
 0x237   :  { %v847_v58 = vpop.f32.mrb[8].mxu0 }
 0x238   :  { %v848_v59 = vadd.f32 %v979_v57, %v847_v58  ;;  %v1412_v60 = vpop.f32.mrb[9].mxu0 }
 0x23a   :  { %v851_v61 = vmax.f32 %v848_v59, 0.0 }
 0x23c   :  { %852 = vst [vmem:[#allocation3] sm:$0xff] %v851_v61 }
 0x23d   :  { %1628 = shalt.err (!%p1625_p4)
}
 0x23e   :  { %s1629_s22 = scalar_lea.hbm %s2214_s5, 128 }
 0x23f   :  { %p1630_p5 = scmp.ne.s32.totalorder %s2214_s5, %s1629_s22  ;;  %p1633_p6 = scmp.lt.u32.totalorder %s1629_s22, %s2214_s5 }
 0x241   :  { %p1635_p7 = pnand %p1633_p6, %p1630_p5 }
 0x243   :  { %1638 = shalt.err (!%p1635_p7)
}
 0x244   :  { %862 = dma.vmem_to_hbm [thread:$0]  %s860_s18, 128, %s2214_s5, [#allocation4]  }
 0x245   :  { %1639 = dma.done.wait [#allocation4], 128  }
 0x246   :  { %1640 = vsyncadd [#allocation4], 4294967168 }
 0x247   :  { %866 = vsyncpa [#allocation4], 1 }

</bundles_post_ra>
